<compile_context>
chip_gen: v7x
topology: tpu7x:2x2x1
jax: 0.10.0
libtpu: 0.0.40
codegen_flags: <defaults>
</compile_context>

<pallas_src>
import functools

import jax
import jax.numpy as jnp
from jax.experimental import pallas as pl
from jax.experimental.pallas import tpu as pltpu

LANE = 128
MIB = 1024 * 1024


def _round_up(x, m):
    return ((x + m - 1) // m) * m


def _vmem_budget_bytes():
    """Usable VMEM budget for a single pallas_call, generation-aware."""
    cap = None
    try:
        info = pltpu.get_tpu_info()
        cap = getattr(info, "vmem_capacity_bytes", None)
    except Exception:
        cap = None
    if not cap:
        cap = 64 * MIB  # v7x physical VMEM — safe lower bound across generations
    return int(cap * 3 // 4)


# --------------------------- feature transform ------------------------------- #
def _xw_kernel(x_ref, w_ref, o_ref):
    # X_tile (bf16) @ W (bf16, resident) -> MXU, f32 accumulate, emit bf16.
    o_ref[...] = jnp.dot(
        x_ref[...], w_ref[...], preferred_element_type=jnp.float32
    ).astype(o_ref.dtype)


def feature_transform(x_bf16, w_bf16, budget):
    """XW = x @ w, bf16 in / bf16 out, with very large row tiles (low overhead)."""
    n_pad, c_in = x_bf16.shape
    c_pad = w_bf16.shape[1]

    tm = 128
    for cand in (8192, 4096, 2048, 1024, 512, 256, 128):
        if n_pad % cand:
            continue
        need = 2 * cand * c_in * 2 + 2 * c_in * c_pad * 2 + 2 * cand * c_pad * 2
        if need <= budget or cand == 128:
            tm = cand
            break

    vmem_limit = int(
        min(budget, max(32 * MIB, 2 * tm * c_in * 2 + 2 * c_in * c_pad * 2
                        + 2 * tm * c_pad * 2 + 4 * MIB))
    )
    return pl.pallas_call(
        _xw_kernel,
        out_shape=jax.ShapeDtypeStruct((n_pad, c_pad), jnp.bfloat16),
        grid=(n_pad // tm,),
        in_specs=[
            pl.BlockSpec((tm, c_in), lambda i: (i, 0)),
            pl.BlockSpec((c_in, c_pad), lambda i: (0, 0)),   # weights resident
        ],
        out_specs=pl.BlockSpec((tm, c_pad), lambda i: (i, 0)),
        compiler_params=pltpu.CompilerParams(
            dimension_semantics=("parallel",),
            vmem_limit_bytes=vmem_limit,
        ),
    )(x_bf16, w_bf16)


# ----------------------------- aggregation ----------------------------------- #
def _agg_scratch_kernel(a_ref, xw_ref, b_ref, o_ref, acc_ref, *, tk, xw_resident):
    """ReLU(A_hat @ XW + b) with an f32 scratch accumulator (bf16 output)."""
    k = pl.program_id(1)

    @pl.when(k == 0)
    def _():
        acc_ref[...] = jnp.zeros_like(acc_ref)

    if xw_resident:
        start = pl.multiple_of(k * tk, tk)
        xw = xw_ref[pl.ds(start, tk), :]
    else:
        xw = xw_ref[...]
    acc_ref[...] += jnp.dot(a_ref[...], xw, preferred_element_type=jnp.float32)

    @pl.when(k == pl.num_programs(1) - 1)
    def _():
        o_ref[...] = jnp.maximum(acc_ref[...] + b_ref[...], 0.0).astype(o_ref.dtype)


def _agg_inplace_kernel(a_ref, xw_ref, b_ref, o_ref, *, tk, xw_resident):
    """ReLU(A_hat @ XW + b), accumulating directly in the resident f32 output."""
    k = pl.program_id(1)

    @pl.when(k == 0)
    def _():
        o_ref[...] = jnp.zeros_like(o_ref)

    if xw_resident:
        start = pl.multiple_of(k * tk, tk)
        xw = xw_ref[pl.ds(start, tk), :]
    else:
        xw = xw_ref[...]
    o_ref[...] += jnp.dot(a_ref[...], xw, preferred_element_type=jnp.float32)

    @pl.when(k == pl.num_programs(1) - 1)
    def _():
        o_ref[...] = jnp.maximum(o_ref[...] + b_ref[...], 0.0)


def aggregate(a_bf16, xw_bf16, b_pad, out_dtype, budget):
    """ReLU(A_hat @ XW + b): row tiles TM x contraction tiles TK, f32 accumulation."""
    n_pad = a_bf16.shape[0]
    c_pad = xw_bf16.shape[1]
    out_bytes = jnp.dtype(out_dtype).itemsize
    use_scratch = out_dtype != jnp.float32

    tk = 256 if n_pad % 256 == 0 else 128

    def footprint(tm, resident):
        a_tile = 2 * tm * tk * 2                       # double-buffered A_hat tile
        out_tile = 2 * tm * c_pad * out_bytes          # resident output block
        acc = tm * c_pad * 4 if use_scratch else 0     # f32 scratch accumulator
        bias = 2 * c_pad * 4
        xw = 2 * n_pad * c_pad * 2 if resident else 2 * tk * c_pad * 2
        return a_tile + out_tile + acc + bias + xw

    tm, xw_resident = 128, False
    for cand in (1024, 512, 256, 128):
        if n_pad % cand:
            continue
        if footprint(cand, True) <= budget:
            tm, xw_resident = cand, True
            break
        if footprint(cand, False) <= budget:
            tm, xw_resident = cand, False
            break

    vmem_limit = int(min(budget, max(32 * MIB, footprint(tm, xw_resident) + 4 * MIB)))

    if xw_resident:
        xw_spec = pl.BlockSpec((n_pad, c_pad), lambda i, k: (0, 0))  # fetched once
        xw_streams = 1
    else:
        xw_spec = pl.BlockSpec((tk, c_pad), lambda i, k: (k, 0))
        xw_streams = n_pad // tm

    flops = 2 * n_pad * n_pad * c_pad
    bytes_accessed = (
        a_bf16.size * 2
        + xw_bf16.size * 2 * xw_streams
        + n_pad * c_pad * out_bytes
        + b_pad.size * 4
    )

    common = dict(
        out_shape=jax.ShapeDtypeStruct((n_pad, c_pad), out_dtype),
        grid=(n_pad // tm, n_pad // tk),
        in_specs=[
            pl.BlockSpec((tm, tk), lambda i, k: (i, k)),     # A_hat tile
            xw_spec,                                         # XW (resident or tiled)
            pl.BlockSpec((1, c_pad), lambda i, k: (0, 0)),   # bias (resident)
        ],
        out_specs=pl.BlockSpec((tm, c_pad), lambda i, k: (i, 0)),
        compiler_params=pltpu.CompilerParams(
            dimension_semantics=("parallel", "arbitrary"),
            vmem_limit_bytes=vmem_limit,
        ),
        cost_estimate=pl.CostEstimate(
            flops=flops, transcendentals=0, bytes_accessed=bytes_accessed
        ),
    )

    if use_scratch:
        kernel = functools.partial(_agg_scratch_kernel, tk=tk, xw_resident=xw_resident)
        return pl.pallas_call(
            kernel,
            scratch_shapes=[pltpu.VMEM((tm, c_pad), jnp.float32)],
            **common,
        )(a_bf16, xw_bf16, b_pad)

    kernel = functools.partial(_agg_inplace_kernel, tk=tk, xw_resident=xw_resident)
    return pl.pallas_call(kernel, **common)(a_bf16, xw_bf16, b_pad)


# ------------------------------ JAX glue -------------------------------------- #
def gcn_normalize(edge_index, edge_weight, num_nodes):
    """Dense A_hat = D^{-1/2} (A + I) D^{-1/2} (GCNConv default: self-loops, sym norm)."""
    src = edge_index[0]
    dst = edge_index[1]
    if edge_weight is None:
        edge_weight = jnp.ones((edge_index.shape[1],), jnp.float32)
    adj = jnp.zeros((num_nodes, num_nodes), jnp.float32)
    adj = adj.at[dst, src].add(edge_weight)                 # message flows src -> dst
    adj = adj + jnp.eye(num_nodes, dtype=jnp.float32)       # self loops, weight 1
    deg = jnp.sum(adj, axis=1)
    dinv = jnp.where(deg > 0, 1.0 / jnp.sqrt(deg), 0.0)
    return dinv[:, None] * adj * dinv[None, :]


class GCNEncoderPallas:
    """Mirrors GCNEncoder.forward (inference mode: dropout == identity)."""

    def __init__(self, in_channels, out_channels, key, dropout=0.2):
        k1, k2 = jax.random.split(key)
        s1 = jnp.sqrt(6.0 / (in_channels + out_channels))
        s2 = jnp.sqrt(6.0 / (out_channels + out_channels))
        self.w1 = jax.random.uniform(k1, (in_channels, out_channels), jnp.float32, -s1, s1)
        self.b1 = jnp.zeros((out_channels,), jnp.float32)
        self.w2 = jax.random.uniform(k2, (out_channels, out_channels), jnp.float32, -s2, s2)
        self.b2 = jnp.zeros((out_channels,), jnp.float32)
        self.dropout = dropout  # TODO(synk): training-mode dropout (random mask) omitted; eval-mode identity used.

    def __call__(self, x, edge_index, edge_weight=None):
        n, c_in = x.shape
        c_out = self.w1.shape[1]
        n_pad = _round_up(max(n, LANE), LANE)      # 128-alignment only (A_hat cost is quadratic in n_pad)
        c_in_pad = _round_up(c_in, LANE)
        c_pad = _round_up(c_out, LANE)
        budget = _vmem_budget_bytes()

        # dense normalized adjacency, zero-padded to (n_pad, n_pad), bf16 for the MXU
        a_hat = gcn_normalize(edge_index, edge_weight, n)
        a_pad = (
            jnp.zeros((n_pad, n_pad), jnp.float32).at[:n, :n].set(a_hat)
        ).astype(jnp.bfloat16)

        # zero-pad nodes / channels; bf16 operand feeds (padded rows/cols stay inert)
        x_pad = (
            jnp.zeros((n_pad, c_in_pad), jnp.float32).at[:n, :c_in].set(x)
        ).astype(jnp.bfloat16)
        w1_pad = (
            jnp.zeros((c_in_pad, c_pad), jnp.float32).at[:c_in, :c_out].set(self.w1)
        ).astype(jnp.bfloat16)
        b1_pad = jnp.zeros((1, c_pad), jnp.float32).at[0, :c_out].set(self.b1)
        w2_pad = (
            jnp.zeros((c_pad, c_pad), jnp.float32).at[:c_out, :c_out].set(self.w2)
        ).astype(jnp.bfloat16)
        b2_pad = jnp.zeros((1, c_pad), jnp.float32).at[0, :c_out].set(self.b2)

        # layer 1: relu(A_hat @ (x @ W1) + b1); dropout = identity (eval); bf16 inter-layer output
        xw1 = feature_transform(x_pad, w1_pad, budget)
        h1 = aggregate(a_pad, xw1, b1_pad, jnp.bfloat16, budget)

        # layer 2: relu(A_hat @ (h1 @ W2) + b2); dropout = identity (eval); f32 final output
        xw2 = feature_transform(h1, w2_pad, budget)
        h2 = aggregate(a_pad, xw2, b2_pad, jnp.float32, budget)

        return h2[:n, :c_out]


# ---------------------------- reference check --------------------------------- #
def reference_forward(model, x, edge_index, edge_weight=None):
    a_hat = gcn_normalize(edge_index, edge_weight, x.shape[0])
    h = jnp.maximum(a_hat @ (x @ model.w1) + model.b1, 0.0)
    h = jnp.maximum(a_hat @ (h @ model.w2) + model.b2, 0.0)
    return h


if __name__ == "__main__":
    key = jax.random.PRNGKey(0)
    k_x, k_e, k_w, k_p = jax.random.split(key, 4)

    num_nodes = 16
    in_channels = 8
    out_channels = 32
    num_edges = 40

    x = jax.random.normal(k_x, (num_nodes, in_channels), jnp.float32)
    edge_index = jax.random.randint(k_e, (2, num_edges), 0, num_nodes, jnp.int32)
    edge_weight = jax.random.uniform(k_w, (num_edges,), jnp.float32, 0.5, 1.5)

    model = GCNEncoderPallas(in_channels, out_channels, k_p, dropout=0.2)

    out = model(x, edge_index, edge_weight)
    out = jax.block_until_ready(out)

    ref = reference_forward(model, x, edge_index, edge_weight)
    assert out.shape == (num_nodes, out_channels)
    # bf16 MXU operands / bf16 inter-layer activation with f32 accumulation -> loosened tolerance
    assert jnp.allclose(out, ref, atol=5e-2, rtol=5e-2), "mismatch vs pure-JAX reference"

    print("KERNEL_OK")
</pallas_src>

<mosaic_0001>
module attributes {stable_mosaic.version = 11 : i64} {
  func.func @_xw_kernel(%arg0: i32, %arg1: memref<128x128xbf16, #tpu.memory_space<vmem>>, %arg2: memref<128x128xbf16, #tpu.memory_space<vmem>>, %arg3: memref<128x128xbf16, #tpu.memory_space<vmem>>) attributes {dimension_semantics = [#tpu.dimension_semantics<parallel>], iteration_bounds = array<i64: 1>, scalar_prefetch = 0 : i64, scratch_operands = 0 : i64, tpu.core_type = #tpu.core_type<tc>, window_params = [{transform_indices = @transform_0, window_bounds = array<i64: 128, 128>}, {pipeline_mode = #tpu.pipeline_mode<synchronous>, transform_indices = @transform_1, window_bounds = array<i64: 128, 128>}, {transform_indices = @transform_2, window_bounds = array<i64: 128, 128>}]} {
    %c0 = arith.constant 0 : index
    %c0_0 = arith.constant 0 : index
    %0 = vector.load %arg1[%c0, %c0_0] : memref<128x128xbf16, #tpu.memory_space<vmem>>, vector<128x128xbf16>
    %c0_1 = arith.constant 0 : index
    %c0_2 = arith.constant 0 : index
    %1 = vector.load %arg2[%c0_1, %c0_2] : memref<128x128xbf16, #tpu.memory_space<vmem>>, vector<128x128xbf16>
    %cst = arith.constant dense<0.000000e+00> : vector<128x128xf32>
    %2 = tpu.matmul %0, %1, %cst {dimension_numbers = #tpu.dot_dimension_numbers<[1], [0], [0], [1], [0, 0, 1, 1], [], []>} : vector<128x128xbf16>, vector<128x128xbf16>, vector<128x128xf32> -> vector<128x128xf32>
    %3 = arith.truncf %2 : vector<128x128xf32> to vector<128x128xbf16>
    %c0_3 = arith.constant 0 : index
    %c0_4 = arith.constant 0 : index
    %4 = vector.load %arg3[%c0_3, %c0_4] : memref<128x128xbf16, #tpu.memory_space<vmem>>, vector<128x128xbf16>
    tpu.vector_store %arg3[%c0_3, %c0_4], %3 {strides = array<i32>} : memref<128x128xbf16, #tpu.memory_space<vmem>>, vector<128x128xbf16>,
    return
  }
  func.func @transform_0(%arg0: i32) -> (i32, i32) {
    %c0_i32 = arith.constant 0 : i32
    %c0_i32_0 = arith.constant 0 : i32
    return %arg0, %c0_i32 : i32, i32
  }
  func.func @transform_1(%arg0: i32) -> (i32, i32) {
    %c0_i32 = arith.constant 0 : i32
    %c0_i32_0 = arith.constant 0 : i32
    %c0_i32_1 = arith.constant 0 : i32
    return %c0_i32, %c0_i32_0 : i32, i32
  }
  func.func @transform_2(%arg0: i32) -> (i32, i32) {
    %c0_i32 = arith.constant 0 : i32
    %c0_i32_0 = arith.constant 0 : i32
    return %arg0, %c0_i32 : i32, i32
  }
}

</mosaic_0001>

<bundles_post_ra>
// kernel: tpu_custom_call.1
= control target key start
LH: loop header
LB: loop body
LE: loop exit
PB: predicated region body
PF: predicated region fallthrough
CT: control target
= control target key end

     0   :  { %7 = vsyncpa [#allocation3], 0  ;;  %s681_s0 = inlined_call_operand.hbm [shape: bf16[128,128], index: 0, kind: input, shape index: {}]   ;;  %s682_s1 = inlined_call_operand.hbm [shape: bf16[128,128], index: 1, kind: input, shape index: {}]   ;;  %s683_s2 = inlined_call_operand.hbm [shape: bf16[128,128], index: 2, kind: output, shape index: {}]  }
   0x1   :  { %8 = vsyncpa [#allocation6], 0 }
   0x2   :  { %9 = vsyncpa [#allocation4], 0  ;;  %s616_s9 = smov [#allocation2]   ;;  %s544_s13 = scalar_lea.hbm %s681_s0, 1024 }
   0x3   :  { %s15_s10 = sshll.u32 %s616_s9, 4  ;;  %p545_p0 = scmp.ne.s32.totalorder %s681_s0, %s544_s13  ;;  %s16_s10 = int_to_ptr.vmem [resolvable:$true] %s15_s10 }
   0x4   :  { %p548_p1 = scmp.lt.u32.totalorder %s544_s13, %s681_s0 }
   0x6   :  { %p550_p2 = pnand %p548_p1, %p545_p0 }
   0x8   :  { %553 = shalt.err (!%p550_p2)
}
   0x9   :  { %s554_s18 = scalar_lea.vmem %s16_s10, 1024  ;;  %p559_p4 = scmp.lt.s32.totalorder %s16_s10, %s16_s10 }
   0xa   :  { %p555_p3 = scmp.ne.s32.totalorder %s16_s10, %s554_s18  ;;  %p560_p5 = scmp.lt.s32.totalorder %s554_s18, %s554_s18 }
   0xc   :  { %p561_p6 = por %p560_p5, %p559_p4 }
   0xe   :  { %p562_p7 = pnand %p561_p6, %p555_p3 }
  0x10   :  { %565 = shalt.err (!%p562_p7)
}
  0x11   :  { %s617_s19 = smov 64   ;;  %s618_s20 = smov 4  }
  0x12   :  { %21 = dma.hbm_to_vmem [thread:$0]  %s681_s0, 1024, %s16_s10, [#allocation3], %s617_s19, %s617_s19, %s618_s20  }
  0x13   :  { %s619_s23 = smov [#allocation5]   ;;  %s566_s27 = scalar_lea.hbm %s682_s1, 1024 }
  0x14   :  { %s27_s24 = sshll.u32 %s619_s23, 4  ;;  %p567_p8 = scmp.ne.s32.totalorder %s682_s1, %s566_s27  ;;  %s28_s24 = int_to_ptr.vmem [resolvable:$true] %s27_s24 }
  0x15   :  { %p570_p9 = scmp.lt.u32.totalorder %s566_s27, %s682_s1 }
  0x17   :  { %p572_p10 = pnand %p570_p9, %p567_p8 }
  0x19   :  { %575 = shalt.err (!%p572_p10)
}
  0x1a   :  { %s576_s4 = scalar_lea.vmem %s28_s24, 1024  ;;  %p581_p12 = scmp.lt.s32.totalorder %s28_s24, %s28_s24 }
  0x1b   :  { %p577_p11 = scmp.ne.s32.totalorder %s28_s24, %s576_s4  ;;  %p582_p13 = scmp.lt.s32.totalorder %s576_s4, %s576_s4 }
  0x1d   :  { %p583_p0 = por %p582_p13, %p581_p12 }
  0x1f   :  { %p584_p1 = pnand %p583_p0, %p577_p11 }
  0x21   :  { %587 = shalt.err (!%p584_p1)
}
  0x22   :  { %33 = dma.hbm_to_vmem [thread:$0]  %s682_s1, 1024, %s28_s24, [#allocation6], %s617_s19, %s617_s19, %s618_s20  }
  0x23   :  { %610 = dma.done.wait [#allocation3], 1024  }
  0x24   :  { %611 = vsyncadd [#allocation3], 4294966272 }
  0x25   :  { %612 = dma.done.wait [#allocation6], 1024  }
  0x26   :  { %613 = vsyncadd [#allocation6], 4294966272  ;;  %v528_v0 = vld [vmem:[#allocation5] sm:$0xff]   ;;  %v529_v1 = vld [vmem:[#allocation5 + $0x8] sm:$0xff]   ;;  %s620_s1 = smov [#allocation7]  }
  0x27   :  { %475 = vmatprep.subr.bf16.mxu0 %v528_v0  ;;  %507 = vmatprep.subr.bf16.mxu1 %v528_v0  ;;  %v530_v2 = vld [vmem:[#allocation5 + $0x10] sm:$0xff]   ;;  %v531_v3 = vld [vmem:[#allocation5 + $0x18] sm:$0xff]   ;;  %v536_v4 = vld [vmem:[#allocation2] sm:$0xff]   ;;  %s351_s6 = sshll.u32 %s620_s1, 4  ;;  %s352_s6 = int_to_ptr.vmem [resolvable:$true] %s351_s6 }
  0x28   :  { %476 = vmatpush3.bf16.msra.mxu0 %v528_v0  ;;  %515 = vmatpush3.bf16.msra.mxu1 %v528_v0  ;;  %v537_v5 = vld [vmem:[#allocation2 + $0x20] sm:$0xff]   ;;  %v533_v7 = vld [vmem:[#allocation5 + $0x28] sm:$0xff]   ;;  %v534_v8 = vld [vmem:[#allocation5 + $0x30] sm:$0xff]   ;;  %s588_s7 = scalar_lea.vmem %s352_s6, 1024  ;;  %p593_p3 = scmp.lt.s32.totalorder %s352_s6, %s352_s6 }
  0x29   :  { %477 = vmatprep.subr.bf16.mxu0 %v529_v1  ;;  %508 = vmatprep.subr.bf16.mxu1 %v529_v1  ;;  %v532_v6 = vld [vmem:[#allocation5 + $0x20] sm:$0xff]   ;;  %v535_v9 = vld [vmem:[#allocation5 + $0x38] sm:$0xff]   ;;  %v538_v10 = vld [vmem:[#allocation2 + $0x8] sm:$0xff]   ;;  %p589_p2 = scmp.ne.s32.totalorder %s352_s6, %s588_s7  ;;  %p594_p4 = scmp.lt.s32.totalorder %s588_s7, %s588_s7 }
  0x2a   :  { %491 = vmatprep.mubr.bf16.mxu0 %v536_v4  ;;  %499 = vmatprep.mubr.bf16.mxu1 %v537_v5  ;;  %v539_v11 = vld [vmem:[#allocation2 + $0x28] sm:$0xff]   ;;  %v540_v12 = vld [vmem:[#allocation2 + $0x10] sm:$0xff]   ;;  %v542_v14 = vld [vmem:[#allocation2 + $0x18] sm:$0xff]  }
  0x2b   :  { %v541_v13 = vld [vmem:[#allocation2 + $0x30] sm:$0xff]   ;;  %v543_v15 = vld [vmem:[#allocation2 + $0x38] sm:$0xff]   ;;  %p595_p5 = por %p594_p4, %p593_p3 }
  0x2c   :  { %478 = vmatpush3.bf16.msra.mxu0 %v529_v1  ;;  %516 = vmatpush3.bf16.msra.mxu1 %v529_v1 }
  0x2d   :  { %479 = vmatprep.subr.bf16.mxu0 %v530_v2  ;;  %509 = vmatprep.subr.bf16.mxu1 %v530_v2  ;;  %p596_p6 = pnand %p595_p5, %p589_p2 }
  0x30   :  { %480 = vmatpush3.bf16.msra.mxu0 %v530_v2  ;;  %517 = vmatpush3.bf16.msra.mxu1 %v530_v2 }
  0x31   :  { %481 = vmatprep.subr.bf16.mxu0 %v531_v3  ;;  %510 = vmatprep.subr.bf16.mxu1 %v531_v3 }
  0x34   :  { %482 = vmatpush3.bf16.msra.mxu0 %v531_v3  ;;  %518 = vmatpush3.bf16.msra.mxu1 %v531_v3 }
  0x35   :  { %483 = vmatprep.subr.bf16.mxu0 %v532_v6  ;;  %511 = vmatprep.subr.bf16.mxu1 %v532_v6 }
  0x38   :  { %484 = vmatpush3.bf16.msra.mxu0 %v532_v6  ;;  %519 = vmatpush3.bf16.msra.mxu1 %v532_v6 }
  0x39   :  { %485 = vmatprep.subr.bf16.mxu0 %v533_v7  ;;  %512 = vmatprep.subr.bf16.mxu1 %v533_v7 }
  0x3c   :  { %486 = vmatpush3.bf16.msra.mxu0 %v533_v7  ;;  %520 = vmatpush3.bf16.msra.mxu1 %v533_v7 }
  0x3d   :  { %487 = vmatprep.subr.bf16.mxu0 %v534_v8  ;;  %513 = vmatprep.subr.bf16.mxu1 %v534_v8 }
  0x40   :  { %488 = vmatpush3.bf16.msra.mxu0 %v534_v8  ;;  %521 = vmatpush3.bf16.msra.mxu1 %v534_v8 }
  0x41   :  { %489 = vmatprep.subr.bf16.mxu0 %v535_v9  ;;  %514 = vmatprep.subr.bf16.mxu1 %v535_v9 }
  0x44   :  { %490 = vmatpush3.bf16.msra.mxu0 %v535_v9  ;;  %522 = vmatpush3.bf16.msra.mxu1 %v535_v9 }
  0x47   :  { %492 = vmatmul.mubr.bf16.vlgmr.msra.gmra.mrb[0].mxu0 %v538_v10  ;;  %500 = vmatmul.mubr.bf16.vlgmr.msra.gmra.mrb[0].mxu1 %v539_v11 }
  0x48   :  { %495 = vmatprep.mubr.bf16.mxu0 %v540_v12  ;;  %503 = vmatprep.mubr.bf16.mxu1 %v541_v13 }
  0x4f   :  { %496 = vmatmul.mubr.bf16.gmra.mrb[4].mxu0 %v542_v14  ;;  %504 = vmatmul.mubr.bf16.gmra.mrb[4].mxu1 %v543_v15 }
 0x11a   :  { %v493_v16 = vpop.f32.mrb[0].mxu0  ;;  %v501_v17 = vpop.f32.mrb[0].mxu1 }
 0x11b   :  { %v203_v18 = vpop.f32.mrb[1].mxu0  ;;  %v235_v19 = vpop.f32.mrb[1].mxu1 }
 0x11c   :  { %v494_v20 = vpop.f32.mrb[2].mxu0  ;;  %v502_v21 = vpop.f32.mrb[2].mxu1 }
 0x11d   :  { %v420_v22 = vpack.c.bf16 %v494_v20, %v493_v16  ;;  %v440_v23 = vpack.c.bf16 %v502_v21, %v501_v17  ;;  %v206_v24 = vpop.f32.mrb[3].mxu0  ;;  %v238_v25 = vpop.f32.mrb[3].mxu1 }
 0x11e   :  { %v415_v26 = vpack.c.bf16 %v206_v24, %v203_v18  ;;  %v435_v27 = vpack.c.bf16 %v238_v25, %v235_v19 }
 0x11f   :  { %452 = vst [vmem:[#allocation7 + $0x8] sm:$0xff] %v420_v22   ;;  %456 = vst [vmem:[#allocation7 + $0x28] sm:$0xff] %v440_v23  }
 0x120   :  { %416 = vst [vmem:[#allocation7] sm:$0xff] %v415_v26   ;;  %455 = vst [vmem:[#allocation7 + $0x20] sm:$0xff] %v435_v27  }
 0x122   :  { %v497_v28 = vpop.f32.mrb[4].mxu0  ;;  %v505_v29 = vpop.f32.mrb[4].mxu1 }
 0x123   :  { %v219_v30 = vpop.f32.mrb[5].mxu0  ;;  %v251_v31 = vpop.f32.mrb[5].mxu1 }
 0x124   :  { %v498_v32 = vpop.f32.mrb[6].mxu0  ;;  %v506_v33 = vpop.f32.mrb[6].mxu1 }
 0x125   :  { %v430_v34 = vpack.c.bf16 %v498_v32, %v497_v28  ;;  %v450_v35 = vpack.c.bf16 %v506_v33, %v505_v29  ;;  %v222_v36 = vpop.f32.mrb[7].mxu0  ;;  %v254_v37 = vpop.f32.mrb[7].mxu1 }
 0x126   :  { %v425_v38 = vpack.c.bf16 %v222_v36, %v219_v30  ;;  %v445_v39 = vpack.c.bf16 %v254_v37, %v251_v31 }
 0x127   :  { %454 = vst [vmem:[#allocation7 + $0x18] sm:$0xff] %v430_v34   ;;  %458 = vst [vmem:[#allocation7 + $0x38] sm:$0xff] %v450_v35  }
 0x128   :  { %453 = vst [vmem:[#allocation7 + $0x10] sm:$0xff] %v425_v38   ;;  %457 = vst [vmem:[#allocation7 + $0x30] sm:$0xff] %v445_v39  }
 0x129   :  { %599 = shalt.err (!%p596_p6)
}
 0x12a   :  { %s600_s10 = scalar_lea.hbm %s683_s2, 1024 }
 0x12b   :  { %p601_p7 = scmp.ne.s32.totalorder %s683_s2, %s600_s10  ;;  %p604_p8 = scmp.lt.u32.totalorder %s600_s10, %s683_s2 }
 0x12d   :  { %p606_p9 = pnand %p604_p8, %p601_p7 }
 0x12f   :  { %609 = shalt.err (!%p606_p9)
}
 0x130   :  { %357 = dma.vmem_to_hbm [thread:$0]  %s352_s6, 1024, %s683_s2, [#allocation4], %s617_s19, %s617_s19, %s618_s20  }
 0x131   :  { %614 = dma.done.wait [#allocation4], 1024  }
 0x132   :  { %615 = vsyncadd [#allocation4], 4294966272 }
 0x133   :  { %361 = vsyncpa [#allocation3], 1 }
 0x134   :  { %362 = vsyncpa [#allocation6], 1 }
 0x135   :  { %363 = vsyncpa [#allocation4], 1 }

</bundles_post_ra>
